<compile_context>
chip_gen: v7x
topology: tpu7x:2x2x1
jax: 0.10.0
libtpu: 0.0.40
codegen_flags: <defaults>
</compile_context>

<pallas_src>
import math
import jax
import jax.numpy as jnp
from jax.experimental import pallas as pl
from jax.experimental.pallas import tpu as pltpu


def _round_up(x, m):
    return ((x + m - 1) // m) * m


def _vmem_limit_bytes():
    """Generation-aware scoped-VMEM limit (~75% of physical VMEM)."""
    phys = 128 * 1024 * 1024
    try:
        phys = int(getattr(pltpu.get_tpu_info(), "vmem_capacity_bytes", phys))
    except Exception:
        pass
    # v5e/v6e (128 MiB) -> 96 MiB, v7x (64 MiB) -> 48 MiB; never below 16 MiB.
    return max(16 * 1024 * 1024, (phys * 3) // 4)


def _resident_spec(block_shape, index_map):
    """Constant-index (VMEM-resident) operand; single-buffer to halve its footprint."""
    try:
        return pl.BlockSpec(block_shape, index_map, pipeline_mode=pl.Buffered(1))
    except TypeError:  # older jax without pipeline_mode: fall back to default buffering
        return pl.BlockSpec(block_shape, index_map)


# ----------------------------- resident-weight path -------------------------


def _logreg_kernel_resident(x_ref, wt_ref, b_ref, o_ref):
    # x_ref: [TM, ft_in], wt_ref: [ft_in, c_pad], b_ref: [1, c_pad],
    # o_ref: [TM, nb_classes] (UNPADDED last dim -> masked store, no extra HBM).
    acc = jnp.dot(x_ref[...], wt_ref[...], preferred_element_type=jnp.float32)
    acc = acc + b_ref[...]
    o_ref[...] = acc[:, : o_ref.shape[1]].astype(o_ref.dtype)


# ----------------------------- K-tiled fallback path -------------------------


def _logreg_kernel_ktiled(x_ref, wt_ref, b_ref, o_ref, acc_ref):
    k = pl.program_id(1)

    @pl.when(k == 0)
    def _():
        acc_ref[...] = jnp.zeros_like(acc_ref)

    acc_ref[...] += jnp.dot(x_ref[...], wt_ref[...], preferred_element_type=jnp.float32)

    @pl.when(k == pl.num_programs(1) - 1)
    def _():
        out = acc_ref[...] + b_ref[...]
        o_ref[...] = out[:, : o_ref.shape[1]].astype(o_ref.dtype)


def _logreg_ktiled(x, wt_p, bias_p, nb_classes, vmem_limit):
    """Fallback for very large ft_in: tile the contraction axis ("arbitrary", last)."""
    n, ft_in = x.shape
    c_pad = wt_p.shape[1]
    budget = vmem_limit - 2 * 1024 * 1024

    tk, tm = 2048, 512

    def fits(tm_, tk_):
        wt_bytes = 2 * 4 * tk_ * c_pad                  # double-buffered W tile
        row_bytes = tm_ * 4 * (2 * tk_ + 3 * c_pad)     # x (x2) + acc + out (x2)
        return wt_bytes + row_bytes <= budget

    while tk > 128 and not fits(tm, tk):
        tk //= 2
    while tm > 8 and not fits(tm, tk):
        tm //= 2
    tm = max(8, min(tm, _round_up(pl.cdiv(n, 2), 8)))

    # Zero-pad the contraction dim so every K tile is full (zeros add nothing).
    k_pad = _round_up(ft_in, tk)
    x_p = jnp.pad(x, ((0, 0), (0, k_pad - ft_in))) if k_pad != ft_in else x
    wt_pp = jnp.pad(wt_p, ((0, k_pad - ft_in), (0, 0))) if k_pad != ft_in else wt_p

    grid = (pl.cdiv(n, tm), k_pad // tk)

    return pl.pallas_call(
        _logreg_kernel_ktiled,
        out_shape=jax.ShapeDtypeStruct((n, nb_classes), x.dtype),
        grid_spec=pltpu.PrefetchScalarGridSpec(
            num_scalar_prefetch=0,
            grid=grid,
            in_specs=[
                pl.BlockSpec((tm, tk), lambda i, k: (i, k)),       # x tile
                pl.BlockSpec((tk, c_pad), lambda i, k: (k, 0)),    # W^T tile
                _resident_spec((1, c_pad), lambda i, k: (0, 0)),   # bias resident
            ],
            out_specs=pl.BlockSpec((tm, nb_classes), lambda i, k: (i, 0)),
            scratch_shapes=[pltpu.VMEM((tm, c_pad), jnp.float32)],
        ),
        compiler_params=pltpu.CompilerParams(
            dimension_semantics=("parallel", "arbitrary"),
            vmem_limit_bytes=vmem_limit,
        ),
        cost_estimate=pl.CostEstimate(
            flops=2 * n * ft_in * nb_classes,
            bytes_accessed=4 * (n * ft_in + ft_in * nb_classes + n * nb_classes + nb_classes),
            transcendentals=0,
        ),
    )(x_p, wt_pp, bias_p)


# ----------------------------------- wrapper --------------------------------


def logreg_forward(x, weight, bias, *, tm_max=4096):
    """x: [N, ft_in], weight: [nb_classes, ft_in] (PyTorch layout), bias: [nb_classes]."""
    n, ft_in = x.shape
    nb_classes = weight.shape[0]

    # Lane-align the MXU rhs only: pad classes to a multiple of 128 on W / bias
    # and transpose W once (one-time, tiny vs. x). Output stays unpadded.
    c_pad = _round_up(max(nb_classes, 1), 128)
    wt_p = jnp.pad(weight, ((0, c_pad - nb_classes), (0, 0))).T        # [ft_in, c_pad]
    bias_p = jnp.pad(bias, (0, c_pad - nb_classes)).reshape(1, c_pad)  # [1, c_pad]

    vmem_limit = _vmem_limit_bytes()

    # Resident-weight path only if the (single-buffered) weight tile is small
    # enough; otherwise fall back to K-axis tiling (never a negative budget).
    resident_w_bytes = 4 * _round_up(ft_in, 8) * c_pad
    if resident_w_bytes > vmem_limit // 4:
        return _logreg_ktiled(x, wt_p, bias_p, nb_classes, vmem_limit)

    # Row tile from the per-generation VMEM budget (x + out double-buffered,
    # plus the f32 MXU result), clamped so the grid keeps >= 2 steps when N
    # allows it (megacore sharding + DMA/compute overlap).
    budget = vmem_limit - 2 * 1024 * 1024 - resident_w_bytes
    bytes_per_row = 4 * (2 * _round_up(ft_in, 128) + 3 * c_pad)
    tm = (budget // bytes_per_row) // 8 * 8
    tm = max(8, min(tm, tm_max, _round_up(pl.cdiv(n, 2), 8)))

    grid = (pl.cdiv(n, tm),)  # ragged last tile handled by Pallas (no jnp.pad of x)

    return pl.pallas_call(
        _logreg_kernel_resident,
        out_shape=jax.ShapeDtypeStruct((n, nb_classes), x.dtype),
        grid_spec=pltpu.PrefetchScalarGridSpec(
            num_scalar_prefetch=0,
            grid=grid,
            in_specs=[
                pl.BlockSpec((tm, ft_in), lambda i: (i, 0)),         # x tile
                _resident_spec((ft_in, c_pad), lambda i: (0, 0)),    # W^T resident
                _resident_spec((1, c_pad), lambda i: (0, 0)),        # bias resident
            ],
            out_specs=pl.BlockSpec((tm, nb_classes), lambda i: (i, 0)),
        ),
        compiler_params=pltpu.CompilerParams(
            dimension_semantics=("parallel",),
            vmem_limit_bytes=vmem_limit,
        ),
        cost_estimate=pl.CostEstimate(
            flops=2 * n * ft_in * nb_classes,
            bytes_accessed=4 * (n * ft_in + ft_in * nb_classes + n * nb_classes + nb_classes),
            transcendentals=0,
        ),
    )(x, wt_p, bias_p)


def init_logreg_params(key, ft_in, nb_classes):
    # Mirrors LogReg.weights_init: xavier_uniform_ on weight, bias zeroed.
    limit = math.sqrt(6.0 / (ft_in + nb_classes))
    weight = jax.random.uniform(
        key, (nb_classes, ft_in), dtype=jnp.float32, minval=-limit, maxval=limit
    )
    bias = jnp.zeros((nb_classes,), dtype=jnp.float32)
    return weight, bias


if __name__ == "__main__":
    key = jax.random.PRNGKey(0)
    k_x, k_w, k_x2, k_w2 = jax.random.split(key, 4)

    # Small shapes consistent with the module's forward (seq of embeddings).
    N, FT_IN, NB_CLASSES = 8, 32, 16
    x = jax.random.normal(k_x, (N, FT_IN), dtype=jnp.float32)
    weight, bias = init_logreg_params(k_w, FT_IN, NB_CLASSES)

    out = logreg_forward(x, weight, bias)
    jax.block_until_ready(out)
    ref = x @ weight.T + bias
    assert out.shape == (N, NB_CLASSES)
    assert jnp.allclose(out, ref, atol=1e-5, rtol=1e-5)

    # Second case: ragged row grid (N not multiple of TM) and non-128 class
    # count with UNPADDED output (masked writeback), nonzero bias.
    N2, FT_IN2, NB_CLASSES2 = 20, 64, 7
    x2 = jax.random.normal(k_x2, (N2, FT_IN2), dtype=jnp.float32)
    w2, b2 = init_logreg_params(k_w2, FT_IN2, NB_CLASSES2)
    b2 = b2 + 0.25

    out2 = logreg_forward(x2, w2, b2)
    jax.block_until_ready(out2)
    ref2 = x2 @ w2.T + b2
    assert out2.shape == (N2, NB_CLASSES2)
    assert jnp.allclose(out2, ref2, atol=1e-5, rtol=1e-5)

    print("KERNEL_OK")
</pallas_src>

<mosaic_0001>
module attributes {stable_mosaic.version = 11 : i64} {
  func.func @_logreg_kernel_resident(%arg0: i32, %arg1: memref<8x32xf32, #tpu.memory_space<vmem>>, %arg2: memref<32x128xf32, #tpu.memory_space<vmem>>, %arg3: memref<1x128xf32, #tpu.memory_space<vmem>>, %arg4: memref<8x16xf32, #tpu.memory_space<vmem>>) attributes {dimension_semantics = [#tpu.dimension_semantics<parallel>], iteration_bounds = array<i64: 1>, scalar_prefetch = 0 : i64, scratch_operands = 0 : i64, tpu.core_type = #tpu.core_type<tc>, window_params = [{transform_indices = @transform_0, window_bounds = array<i64: 8, 32>}, {pipeline_mode = #tpu.pipeline_mode<synchronous>, transform_indices = @transform_1, window_bounds = array<i64: 32, 128>}, {pipeline_mode = #tpu.pipeline_mode<synchronous>, transform_indices = @transform_2, window_bounds = array<i64: 1, 128>}, {transform_indices = @transform_3, window_bounds = array<i64: 8, 16>}]} {
    %c0 = arith.constant 0 : index
    %c0_0 = arith.constant 0 : index
    %0 = vector.load %arg1[%c0, %c0_0] : memref<8x32xf32, #tpu.memory_space<vmem>>, vector<8x32xf32>
    %c0_1 = arith.constant 0 : index
    %c0_2 = arith.constant 0 : index
    %1 = vector.load %arg2[%c0_1, %c0_2] : memref<32x128xf32, #tpu.memory_space<vmem>>, vector<32x128xf32>
    %cst = arith.constant dense<0.000000e+00> : vector<8x128xf32>
    %2 = tpu.matmul %0, %1, %cst {dimension_numbers = #tpu.dot_dimension_numbers<[1], [0], [0], [1], [0, 0, 1, 1], [], []>} : vector<8x32xf32>, vector<32x128xf32>, vector<8x128xf32> -> vector<8x128xf32>
    %c0_3 = arith.constant 0 : index
    %c0_4 = arith.constant 0 : index
    %3 = vector.load %arg3[%c0_3, %c0_4] : memref<1x128xf32, #tpu.memory_space<vmem>>, vector<1x128xf32>
    %4 = vector.broadcast %3 : vector<1x128xf32> to vector<8x128xf32>
    %5 = arith.addf %2, %4 : vector<8x128xf32>
    %6 = vector.extract_strided_slice %5 {offsets = [0, 0], sizes = [8, 16], strides = [1, 1]} : vector<8x128xf32> to vector<8x16xf32>
    %c0_5 = arith.constant 0 : index
    %c0_6 = arith.constant 0 : index
    %7 = vector.load %arg4[%c0_5, %c0_6] : memref<8x16xf32, #tpu.memory_space<vmem>>, vector<8x16xf32>
    tpu.vector_store %arg4[%c0_5, %c0_6], %6 {strides = array<i32>} : memref<8x16xf32, #tpu.memory_space<vmem>>, vector<8x16xf32>,
    return
  }
  func.func @transform_0(%arg0: i32) -> (i32, i32) {
    %c0_i32 = arith.constant 0 : i32
    %c0_i32_0 = arith.constant 0 : i32
    return %arg0, %c0_i32 : i32, i32
  }
  func.func @transform_1(%arg0: i32) -> (i32, i32) {
    %c0_i32 = arith.constant 0 : i32
    %c0_i32_0 = arith.constant 0 : i32
    %c0_i32_1 = arith.constant 0 : i32
    return %c0_i32, %c0_i32_0 : i32, i32
  }
  func.func @transform_2(%arg0: i32) -> (i32, i32) {
    %c0_i32 = arith.constant 0 : i32
    %c0_i32_0 = arith.constant 0 : i32
    %c0_i32_1 = arith.constant 0 : i32
    return %c0_i32, %c0_i32_0 : i32, i32
  }
  func.func @transform_3(%arg0: i32) -> (i32, i32) {
    %c0_i32 = arith.constant 0 : i32
    %c0_i32_0 = arith.constant 0 : i32
    return %arg0, %c0_i32 : i32, i32
  }
}

</mosaic_0001>

<bundles_post_ra>
// kernel: tpu_custom_call.1
= control target key start
LH: loop header
LB: loop body
LE: loop exit
PB: predicated region body
PF: predicated region fallthrough
CT: control target
= control target key end

     0   :  { %8 = vsyncpa [#allocation3], 0  ;;  %s360_s0 = inlined_call_operand.hbm [shape: f32[8,32], index: 0, kind: input, shape index: {}]   ;;  %s361_s1 = inlined_call_operand.hbm [shape: f32[32,128], index: 1, kind: input, shape index: {}]   ;;  %s362_s2 = inlined_call_operand.hbm [shape: f32[1,128], index: 2, kind: input, shape index: {}]   ;;  %s363_s3 = inlined_call_operand.hbm [shape: f32[8,16], index: 3, kind: output, shape index: {}]  }
   0x1   :  { %9 = vsyncpa [#allocation6], 0 }
   0x2   :  { %10 = vsyncpa [#allocation4], 0  ;;  %s283_s12 = smov [#allocation5]   ;;  %s189_s16 = scalar_lea.hbm %s361_s1, 512 }
   0x3   :  { %s26_s13 = sshll.u32 %s283_s12, 4  ;;  %p190_p0 = scmp.ne.s32.totalorder %s361_s1, %s189_s16  ;;  %s27_s13 = int_to_ptr.vmem [resolvable:$true] %s26_s13 }
   0x4   :  { %p193_p1 = scmp.lt.u32.totalorder %s189_s16, %s361_s1 }
   0x6   :  { %p195_p2 = pnand %p193_p1, %p190_p0 }
   0x8   :  { %198 = shalt.err (!%p195_p2)
}
   0x9   :  { %s199_s21 = scalar_lea.vmem %s27_s13, 512  ;;  %p204_p4 = scmp.lt.s32.totalorder %s27_s13, %s27_s13 }
   0xa   :  { %p200_p3 = scmp.ne.s32.totalorder %s27_s13, %s199_s21  ;;  %p205_p5 = scmp.lt.s32.totalorder %s199_s21, %s199_s21 }
   0xc   :  { %p206_p6 = por %p205_p5, %p204_p4 }
   0xe   :  { %p207_p7 = pnand %p206_p6, %p200_p3 }
  0x10   :  { %210 = shalt.err (!%p207_p7)
}
  0x11   :  { %s284_s22 = smov 128   ;;  %s285_s23 = smov 8  }
  0x12   :  { %32 = dma.hbm_to_vmem [thread:$0]  %s361_s1, 512, %s27_s13, [#allocation6], %s284_s22, %s284_s22, %s285_s23  }
  0x13   :  { %s286_s26 = smov [#allocation2]   ;;  %s287_s28 = smov [#allocation7]  }
  0x14   :  { %s17_s27 = sshll.u32 %s286_s26, 4  ;;  %s39_s29 = sshll.u32 %s287_s28, 4  ;;  %s18_s27 = int_to_ptr.vmem [resolvable:$true] %s17_s27  ;;  %s40_s29 = int_to_ptr.vmem [resolvable:$true] %s39_s29 }
  0x15   :  { %s211_s5 = scalar_lea.hbm %s360_s0, 128 }
  0x16   :  { %p212_p8 = scmp.ne.s32.totalorder %s360_s0, %s211_s5  ;;  %p215_p9 = scmp.lt.u32.totalorder %s211_s5, %s360_s0 }
  0x18   :  { %p217_p10 = pnand %p215_p9, %p212_p8 }
  0x1a   :  { %220 = shalt.err (!%p217_p10)
}
  0x1b   :  { %s221_s1 = scalar_lea.vmem %s18_s27, 128  ;;  %p226_p12 = scmp.lt.s32.totalorder %s18_s27, %s18_s27 }
  0x1c   :  { %p222_p11 = scmp.ne.s32.totalorder %s18_s27, %s221_s1  ;;  %p227_p13 = scmp.lt.s32.totalorder %s221_s1, %s221_s1 }
  0x1e   :  { %p228_p0 = por %p227_p13, %p226_p12 }
  0x20   :  { %p229_p1 = pnand %p228_p0, %p222_p11 }
  0x22   :  { %232 = shalt.err (!%p229_p1)
}
  0x23   :  { %20 = dma.hbm_to_vmem [thread:$0]  %s360_s0, 128, %s18_s27, [#allocation3]  }
  0x24   :  { %s233_s14 = scalar_lea.hbm %s362_s2, 16 }
  0x25   :  { %p234_p2 = scmp.ne.s32.totalorder %s362_s2, %s233_s14  ;;  %p237_p3 = scmp.lt.u32.totalorder %s233_s14, %s362_s2 }
  0x27   :  { %p239_p4 = pnand %p237_p3, %p234_p2 }
  0x29   :  { %242 = shalt.err (!%p239_p4)
}
  0x2a   :  { %s243_s19 = scalar_lea.vmem %s40_s29, 16  ;;  %s247_s20 = scalar_lea.vmem %s40_s29, 32 }
  0x2b   :  { %p244_p5 = scmp.ne.s32.totalorder %s40_s29, %s243_s19  ;;  %p248_p6 = scmp.lt.s32.totalorder %s40_s29, %s40_s29 }
  0x2c   :  { %p249_p7 = scmp.lt.s32.totalorder %s247_s20, %s243_s19 }
  0x2e   :  { %p250_p8 = por %p249_p7, %p248_p6 }
  0x30   :  { %p251_p9 = pnand %p250_p8, %p244_p5 }
  0x32   :  { %254 = shalt.err (!%p251_p9)
}
  0x33   :  { %42 = dma.hbm_to_vmem [thread:$0]  %s362_s2, 16, %s40_s29, [#allocation6]  }
  0x34   :  { %277 = dma.done.wait [#allocation3], 128  }
  0x35   :  { %278 = vsyncadd [#allocation3], 4294967168 }
  0x36   :  { %279 = dma.done.wait [#allocation6], 528  }
  0x37   :  { %280 = vsyncadd [#allocation6], 4294966768  ;;  %v288_v0 = vmov 0.0|0.0   ;;  %vm289_vm0 = vmmov 0   ;;  %v290_v1 = vmov 0.0   ;;  %v53_v2 = vld [vmem:[#allocation5] sm:$0xff] }
  0x38   :  { %174 = vmatprep.subr.bf16.mxu0 %v288_v0  ;;  %171 = vmatprep.mubr.msk.f32.mxu0 %vm289_vm0, %v290_v1  ;;  %v54_v3 = vld [vmem:[#allocation5 + $0x8] sm:$0xff]  ;;  %v55_v4 = vld [vmem:[#allocation5 + $0x10] sm:$0xff]  ;;  %v56_v6 = vld [vmem:[#allocation5 + $0x18] sm:$0xff]  ;;  %vm64_vm1 = vcmask 261120   ;;  %s291_s2 = smov [#allocation8]   ;;  %vm138_vm2 = vcmask 130048  }
  0x39   :  { %v175_v5 = vpack.c.bf16 %v54_v3, %v53_v2  ;;  %v178_v7 = vpack.c.bf16 %v56_v6, %v55_v4  ;;  %v52_v8 = vld [vmem:[#allocation2] sm:$0xff]  ;;  %v156_v9 = vld [vmem:[#allocation7] ss:$0 sm:$0xff]  ;;  %s146_s22 = sshll.u32 %s291_s2, 4  ;;  %s147_s22 = int_to_ptr.vmem [resolvable:$true] %s146_s22 }
  0x3a   :  { %s255_s23 = scalar_lea.vmem %s147_s22, 128  ;;  %p260_p11 = scmp.lt.s32.totalorder %s147_s22, %s147_s22 }
  0x3b   :  { %176 = vmatpush3.bf16.msra.mxu0 %v175_v5  ;;  %p256_p10 = scmp.ne.s32.totalorder %s147_s22, %s255_s23  ;;  %p261_p12 = scmp.lt.s32.totalorder %s255_s23, %s255_s23 }
  0x3c   :  { %177 = vmatprep.subr.bf16.mxu0 %v288_v0 }
  0x3d   :  { %p262_p13 = por %p261_p12, %p260_p11 }
  0x3f   :  { %179 = vmatpush3.bf16.msra.mxu0 %v178_v7  ;;  %p263_p0 = pnand %p262_p13, %p256_p10 }
  0x42   :  { %172 = vmatmul.mubr.msk.f32.vlgmr.msra.gmra.mrb[0].mxu0 %vm64_vm1, %v52_v8 }
 0x115   :  { %v134_v10 = vpop.f32.mrb[0].mxu0 }
 0x116   :  { %v135_v11 = vadd.f32 %v156_v9, %v134_v10  ;;  %v173_v12 = vpop.f32.mrb[1].mxu0 }
 0x118   :  { %139 = vst.msk [vmem:[#allocation8] sm:$0xff] %vm138_vm2, %v135_v11 }
 0x119   :  { %266 = shalt.err (!%p263_p0)
}
 0x11a   :  { %s267_s26 = scalar_lea.hbm %s363_s3, 128 }
 0x11b   :  { %p268_p1 = scmp.ne.s32.totalorder %s363_s3, %s267_s26  ;;  %p271_p2 = scmp.lt.u32.totalorder %s267_s26, %s363_s3 }
 0x11d   :  { %p273_p3 = pnand %p271_p2, %p268_p1 }
 0x11f   :  { %276 = shalt.err (!%p273_p3)
}
 0x120   :  { %149 = dma.vmem_to_hbm [thread:$0]  %s147_s22, 128, %s363_s3, [#allocation4]  }
 0x121   :  { %281 = dma.done.wait [#allocation4], 128  }
 0x122   :  { %282 = vsyncadd [#allocation4], 4294967168 }
 0x123   :  { %153 = vsyncpa [#allocation3], 1 }
 0x124   :  { %154 = vsyncpa [#allocation6], 1 }
 0x125   :  { %155 = vsyncpa [#allocation4], 1 }

</bundles_post_ra>
